<compile_context>
chip_gen: v7x
topology: tpu7x:2x2x1
jax: 0.10.0
libtpu: 0.0.40
codegen_flags: <defaults>
</compile_context>

<pallas_src>
import functools

import jax
import jax.numpy as jnp
from jax import lax
from jax.experimental import pallas as pl
from jax.experimental.pallas import tpu as pltpu


_BN_EPS = 1e-5
_LEAKY_SLOPE = 0.01          # nn.LeakyReLU() default negative_slope


# ----------------------------------------------------------------------------
# Fused kernel: z = x @ W^T (accumulated over C tiles) + BN stats, then the
# in-kernel epilogue (mean/var/scale/shift, folded offset, LeakyReLU).
#   x_ref     : (M, tc)  f32   M = B*HW
#   wt_ref    : (tc, tE) bf16  W^T block
#   wsum_ref  : (1, tE)  f32   sum_c W[e, c]
#   bias_ref  : (1, tE)  f32
#   gamma_ref : (HW, 1)  f32
#   beta_ref  : (HW, 1)  f32
#   out_ref   : (M, tE)  f32   resident accumulator, overwritten with y at the end
#   s_ref/sq_ref : (M, 1) f32  VMEM scratch (per-row sum / sum of squares over C)
# ----------------------------------------------------------------------------
def _fused_mlp_kernel(x_ref, wt_ref, wsum_ref, bias_ref, gamma_ref, beta_ref,
                      out_ref, s_ref, sq_ref, *, batch, hw, inv_cnt):
    ci = pl.program_id(1)
    n_c = pl.num_programs(1)

    @pl.when(ci == 0)
    def _init():
        out_ref[...] = jnp.zeros_like(out_ref)
        s_ref[...] = jnp.zeros_like(s_ref)
        sq_ref[...] = jnp.zeros_like(sq_ref)

    xb = x_ref[...]                                           # (M, tc) f32
    # Canonical (M, tc) x (tc, tE) MXU matmul, f32 accumulation into the resident
    # output block (raw projection z; BN + bias are applied in the epilogue).
    out_ref[...] += lax.dot_general(
        xb.astype(jnp.bfloat16), wt_ref[...],
        dimension_numbers=(((1,), (0,)), ((), ())),
        preferred_element_type=jnp.float32)
    # Per-row (= per (batch, position)) partial sums for the BatchNorm statistics.
    s_ref[...] += jnp.sum(xb, axis=1, keepdims=True)          # (M, 1)
    sq_ref[...] += jnp.sum(xb * xb, axis=1, keepdims=True)    # (M, 1)

    @pl.when(ci == n_c - 1)
    def _epilogue():
        s_all = s_ref[...]                                    # (M, 1)
        sq_all = sq_ref[...]
        # Fold the per-(b, p) channel sums over the batch dim (rows p, HW+p, ...).
        ssum = s_all[0:hw, :]
        sqsum = sq_all[0:hw, :]
        for b in range(1, batch):
            ssum = ssum + s_all[b * hw:(b + 1) * hw, :]
            sqsum = sqsum + sq_all[b * hw:(b + 1) * hw, :]
        mean = ssum * inv_cnt                                  # (HW, 1)
        # Biased variance (E[x^2] - E[x]^2), clamped at 0 (matches training-mode BN).
        var = jnp.maximum(sqsum * inv_cnt - mean * mean, 0.0)
        scale = gamma_ref[...] * lax.rsqrt(var + _BN_EPS)      # (HW, 1)
        shift = beta_ref[...] - mean * scale                   # (HW, 1)
        # BN shift folded through the linear layer:
        #   offset[p, e] = shift_p * sum_c W[e, c] + bias[e]
        offset = shift * wsum_ref[...] + bias_ref[...]         # (HW, tE)
        for b in range(batch):
            zb = out_ref[b * hw:(b + 1) * hw, :]               # (HW, tE)
            yb = scale * zb + offset
            out_ref[b * hw:(b + 1) * hw, :] = jnp.where(
                yb >= 0, yb, _LEAKY_SLOPE * yb)                # LeakyReLU


# ----------------------------------------------------------------------------
# VMEM-budget-aware channel tile (covers v5e 16 MiB default / v7x 64 MiB VMEM).
# ----------------------------------------------------------------------------
def _pick_c_tile(C, M, tE, budget_bytes=24 * 1024 * 1024):
    def cost(tc):
        x_bytes = 2 * M * tc * 4          # f32 x block, double-buffered
        w_bytes = 2 * tc * tE * 2         # bf16 weight block, double-buffered
        out_bytes = 2 * M * tE * 4        # resident f32 output block
        stat_bytes = 2 * M * 128 * 4      # (M, 1) scratch, lane-padded
        return x_bytes + w_bytes + out_bytes + stat_bytes

    if C <= 128:
        return C
    cands = [t for t in (C, 8192, 4096, 2048, 1024, 512, 256, 128)
             if t <= C and C % t == 0]
    for tc in cands:
        if cost(tc) <= budget_bytes:
            return tc
    return cands[-1]


# ----------------------------------------------------------------------------
# One-time parameter prep (hoisted out of the jitted forward).
# ----------------------------------------------------------------------------
def prepare_params(params):
    w = jnp.asarray(params["proj_w"], jnp.float32)            # (E, C)
    return {
        "wt": w.T.astype(jnp.bfloat16),                       # (C, E) MXU operand
        "wsum": jnp.sum(w, axis=1).reshape(1, -1),            # (1, E) sum_c W[e, c]
        "bias": jnp.asarray(params["proj_b"], jnp.float32).reshape(1, -1),
        "gamma_col": jnp.asarray(params["bn_gamma"], jnp.float32).reshape(-1, 1),
        "beta_col": jnp.asarray(params["bn_beta"], jnp.float32).reshape(-1, 1),
    }


# ----------------------------------------------------------------------------
# Full forward (matches MLP.forward; BatchNorm1d in default training mode).
# ----------------------------------------------------------------------------
@jax.jit
def mlp_forward(x, kparams):
    B, C, H, W = x.shape
    HW = H * W
    M = B * HW
    E = kparams["wt"].shape[1]

    # One XLA transpose: [B, C, HW] -> [B, HW, C] -> [M, C].  Folding B into the
    # matmul M dimension fills the MXU rows and makes every HBM stream lane-dense.
    xr = x.reshape(B, C, HW).transpose(0, 2, 1).reshape(M, C)

    tE = E                        # single E block (split E here to feed both v7x cores)
    tc = _pick_c_tile(C, M, tE)
    n_c = C // tc

    if n_c >= 4:
        # Deepen prefetch on the only large streamed input when the K loop is long.
        x_spec = pl.BlockSpec((M, tc), lambda e, c: (0, c),
                              pipeline_mode=pl.Buffered(3))
    else:
        x_spec = pl.BlockSpec((M, tc), lambda e, c: (0, c))

    kernel = functools.partial(
        _fused_mlp_kernel, batch=B, hw=HW, inv_cnt=1.0 / float(B * C))

    out = pl.pallas_call(
        kernel,
        out_shape=jax.ShapeDtypeStruct((M, E), jnp.float32),
        grid=(E // tE, n_c),
        in_specs=[
            x_spec,
            pl.BlockSpec((tc, tE), lambda e, c: (c, e)),
            pl.BlockSpec((1, tE), lambda e, c: (0, e)),
            pl.BlockSpec((1, tE), lambda e, c: (0, e)),
            pl.BlockSpec((HW, 1), lambda e, c: (0, 0)),
            pl.BlockSpec((HW, 1), lambda e, c: (0, 0)),
        ],
        out_specs=pl.BlockSpec((M, tE), lambda e, c: (0, e)),
        scratch_shapes=[pltpu.VMEM((M, 1), jnp.float32),
                        pltpu.VMEM((M, 1), jnp.float32)],
        compiler_params=pltpu.CompilerParams(
            dimension_semantics=("parallel", "arbitrary"),
            vmem_limit_bytes=40 * 1024 * 1024),
    )(xr, kparams["wt"], kparams["wsum"], kparams["bias"],
      kparams["gamma_col"], kparams["beta_col"])

    return out.reshape(B, HW, E)


# ----------------------------------------------------------------------------
# Pure-JAX reference (direct transcription of the PyTorch forward).
# ----------------------------------------------------------------------------
def mlp_reference(x, params):
    B, C, H, W = x.shape
    xt = jnp.transpose(x.reshape(B, C, H * W), (0, 2, 1))        # [B, HW, C]
    mean = jnp.mean(xt, axis=(0, 2), keepdims=True)
    var = jnp.mean((xt - mean) ** 2, axis=(0, 2), keepdims=True)
    xn = (xt - mean) / jnp.sqrt(var + _BN_EPS)
    xn = xn * params["bn_gamma"][None, :, None] + params["bn_beta"][None, :, None]
    y = jnp.einsum("bpc,ec->bpe", xn, params["proj_w"]) + params["proj_b"]
    return jnp.where(y >= 0, y, _LEAKY_SLOPE * y)


if __name__ == "__main__":
    # Shapes consistent with the module: bn=8 -> H*W = 64; small C / E TPU tiles.
    B, Cin, H, W = 2, 256, 8, 8
    E = 128

    key = jax.random.PRNGKey(0)
    kx, kw, kb, kg, kbt = jax.random.split(key, 5)
    x = jax.random.normal(kx, (B, Cin, H, W), jnp.float32)
    params = {
        "proj_w": 0.05 * jax.random.normal(kw, (E, Cin), jnp.float32),   # Linear weight [E, C]
        "proj_b": 0.05 * jax.random.normal(kb, (E,), jnp.float32),       # Linear bias  [E]
        "bn_gamma": 1.0 + 0.1 * jax.random.normal(kg, (H * W,), jnp.float32),
        "bn_beta": 0.1 * jax.random.normal(kbt, (H * W,), jnp.float32),
    }

    kparams = prepare_params(params)              # one-time prep, outside the jit
    y = mlp_forward(x, kparams)
    y = jax.block_until_ready(y)

    assert y.shape == (B, H * W, E), y.shape
    assert bool(jnp.all(jnp.isfinite(y)))

    ref = mlp_reference(x, params)
    err = float(jnp.max(jnp.abs(y - ref)))
    assert err < 5e-2, f"max abs error vs reference: {err}"

    print("KERNEL_OK")
</pallas_src>

<mosaic_0001>
module attributes {stable_mosaic.version = 11 : i64} {
  func.func @_fused_mlp_kernel(%arg0: i32, %arg1: i32, %arg2: memref<128x256xf32, #tpu.memory_space<vmem>>, %arg3: memref<256x128xbf16, #tpu.memory_space<vmem>>, %arg4: memref<1x128xf32, #tpu.memory_space<vmem>>, %arg5: memref<1x128xf32, #tpu.memory_space<vmem>>, %arg6: memref<64x1xf32, #tpu.memory_space<vmem>>, %arg7: memref<64x1xf32, #tpu.memory_space<vmem>>, %arg8: memref<128x128xf32, #tpu.memory_space<vmem>>, %arg9: memref<128x1xf32, #tpu.memory_space<vmem>>, %arg10: memref<128x1xf32, #tpu.memory_space<vmem>>) attributes {dimension_semantics = [#tpu.dimension_semantics<parallel>, #tpu.dimension_semantics<arbitrary>], iteration_bounds = array<i64: 1, 1>, scalar_prefetch = 0 : i64, scratch_operands = 2 : i64, tpu.core_type = #tpu.core_type<tc>, window_params = [{transform_indices = @transform_0, window_bounds = array<i64: 128, 256>}, {transform_indices = @transform_1, window_bounds = array<i64: 256, 128>}, {transform_indices = @transform_2, window_bounds = array<i64: 1, 128>}, {transform_indices = @transform_3, window_bounds = array<i64: 1, 128>}, {pipeline_mode = #tpu.pipeline_mode<synchronous>, transform_indices = @transform_4, window_bounds = array<i64: 64, 1>}, {pipeline_mode = #tpu.pipeline_mode<synchronous>, transform_indices = @transform_5, window_bounds = array<i64: 64, 1>}, {transform_indices = @transform_6, window_bounds = array<i64: 128, 128>}]} {
    %c0_i32 = arith.constant 0 : i32
    %0 = arith.cmpi eq, %arg1, %c0_i32 : i32
    %1 = arith.extui %0 : i1 to i32
    %c0_i32_0 = arith.constant 0 : i32
    %2 = arith.cmpi ne, %1, %c0_i32_0 : i32
    scf.if %2 {
      %cst_20 = arith.constant 0.000000e+00 : f32
      %24 = vector.broadcast %cst_20 : f32 to vector<128x128xf32>
      %c0_21 = arith.constant 0 : index
      %c0_22 = arith.constant 0 : index
      %25 = vector.load %arg8[%c0_21, %c0_22] : memref<128x128xf32, #tpu.memory_space<vmem>>, vector<128x128xf32>
      tpu.vector_store %arg8[%c0_21, %c0_22], %24 {strides = array<i32>} : memref<128x128xf32, #tpu.memory_space<vmem>>, vector<128x128xf32>,
      %cst_23 = arith.constant 0.000000e+00 : f32
      %26 = vector.broadcast %cst_23 : f32 to vector<128x1xf32>
      %c0_24 = arith.constant 0 : index
      %c0_25 = arith.constant 0 : index
      %27 = vector.load %arg9[%c0_24, %c0_25] : memref<128x1xf32, #tpu.memory_space<vmem>>, vector<128x1xf32>
      tpu.vector_store %arg9[%c0_24, %c0_25], %26 {strides = array<i32>} : memref<128x1xf32, #tpu.memory_space<vmem>>, vector<128x1xf32>,
      %cst_26 = arith.constant 0.000000e+00 : f32
      %28 = vector.broadcast %cst_26 : f32 to vector<128x1xf32>
      %c0_27 = arith.constant 0 : index
      %c0_28 = arith.constant 0 : index
      %29 = vector.load %arg10[%c0_27, %c0_28] : memref<128x1xf32, #tpu.memory_space<vmem>>, vector<128x1xf32>
      tpu.vector_store %arg10[%c0_27, %c0_28], %28 {strides = array<i32>} : memref<128x1xf32, #tpu.memory_space<vmem>>, vector<128x1xf32>,
    } else {
    }
    %c0 = arith.constant 0 : index
    %c0_1 = arith.constant 0 : index
    %3 = vector.load %arg2[%c0, %c0_1] : memref<128x256xf32, #tpu.memory_space<vmem>>, vector<128x256xf32>
    %c0_2 = arith.constant 0 : index
    %c0_3 = arith.constant 0 : index
    %4 = vector.load %arg8[%c0_2, %c0_3] : memref<128x128xf32, #tpu.memory_space<vmem>>, vector<128x128xf32>
    %5 = arith.truncf %3 : vector<128x256xf32> to vector<128x256xbf16>
    %c0_4 = arith.constant 0 : index
    %c0_5 = arith.constant 0 : index
    %6 = vector.load %arg3[%c0_4, %c0_5] : memref<256x128xbf16, #tpu.memory_space<vmem>>, vector<256x128xbf16>
    %cst = arith.constant dense<0.000000e+00> : vector<128x128xf32>
    %7 = tpu.matmul %5, %6, %cst {dimension_numbers = #tpu.dot_dimension_numbers<[1], [0], [0], [1], [0, 0, 1, 1], [], []>} : vector<128x256xbf16>, vector<256x128xbf16>, vector<128x128xf32> -> vector<128x128xf32>
    %8 = arith.addf %4, %7 : vector<128x128xf32>
    %c0_6 = arith.constant 0 : index
    %c0_7 = arith.constant 0 : index
    %9 = vector.load %arg8[%c0_6, %c0_7] : memref<128x128xf32, #tpu.memory_space<vmem>>, vector<128x128xf32>
    tpu.vector_store %arg8[%c0_6, %c0_7], %8 {strides = array<i32>} : memref<128x128xf32, #tpu.memory_space<vmem>>, vector<128x128xf32>,
    %c0_8 = arith.constant 0 : index
    %c0_9 = arith.constant 0 : index
    %10 = vector.load %arg9[%c0_8, %c0_9] : memref<128x1xf32, #tpu.memory_space<vmem>>, vector<128x1xf32>
    %cst_10 = arith.constant dense<0.000000e+00> : vector<128xf32>
    %11 = vector.multi_reduction <add>, %3, %cst_10 [1] : vector<128x256xf32> to vector<128xf32>
    %12 = vector.shape_cast %11 : vector<128xf32> to vector<128x1xf32>
    %13 = arith.addf %10, %12 : vector<128x1xf32>
    %c0_11 = arith.constant 0 : index
    %c0_12 = arith.constant 0 : index
    %14 = vector.load %arg9[%c0_11, %c0_12] : memref<128x1xf32, #tpu.memory_space<vmem>>, vector<128x1xf32>
    tpu.vector_store %arg9[%c0_11, %c0_12], %13 {strides = array<i32>} : memref<128x1xf32, #tpu.memory_space<vmem>>, vector<128x1xf32>,
    %c0_13 = arith.constant 0 : index
    %c0_14 = arith.constant 0 : index
    %15 = vector.load %arg10[%c0_13, %c0_14] : memref<128x1xf32, #tpu.memory_space<vmem>>, vector<128x1xf32>
    %16 = arith.mulf %3, %3 : vector<128x256xf32>
    %cst_15 = arith.constant dense<0.000000e+00> : vector<128xf32>
    %17 = vector.multi_reduction <add>, %16, %cst_15 [1] : vector<128x256xf32> to vector<128xf32>
    %18 = vector.shape_cast %17 : vector<128xf32> to vector<128x1xf32>
    %19 = arith.addf %15, %18 : vector<128x1xf32>
    %c0_16 = arith.constant 0 : index
    %c0_17 = arith.constant 0 : index
    %20 = vector.load %arg10[%c0_16, %c0_17] : memref<128x1xf32, #tpu.memory_space<vmem>>, vector<128x1xf32>
    tpu.vector_store %arg10[%c0_16, %c0_17], %19 {strides = array<i32>} : memref<128x1xf32, #tpu.memory_space<vmem>>, vector<128x1xf32>,
    %c0_i32_18 = arith.constant 0 : i32
    %21 = arith.cmpi eq, %arg1, %c0_i32_18 : i32
    %22 = arith.extui %21 : i1 to i32
    %c0_i32_19 = arith.constant 0 : i32
    %23 = arith.cmpi ne, %22, %c0_i32_19 : i32
    scf.if %23 {
      %c0_20 = arith.constant 0 : index
      %c0_21 = arith.constant 0 : index
      %24 = vector.load %arg9[%c0_20, %c0_21] : memref<128x1xf32, #tpu.memory_space<vmem>>, vector<128x1xf32>
      %c0_22 = arith.constant 0 : index
      %c0_23 = arith.constant 0 : index
      %25 = vector.load %arg10[%c0_22, %c0_23] : memref<128x1xf32, #tpu.memory_space<vmem>>, vector<128x1xf32>
      %26 = vector.extract_strided_slice %24 {offsets = [0, 0], sizes = [64, 1], strides = [1, 1]} : vector<128x1xf32> to vector<64x1xf32>
      %27 = vector.extract_strided_slice %25 {offsets = [0, 0], sizes = [64, 1], strides = [1, 1]} : vector<128x1xf32> to vector<64x1xf32>
      %28 = vector.extract_strided_slice %24 {offsets = [64, 0], sizes = [64, 1], strides = [1, 1]} : vector<128x1xf32> to vector<64x1xf32>
      %29 = arith.addf %26, %28 : vector<64x1xf32>
      %30 = vector.extract_strided_slice %25 {offsets = [64, 0], sizes = [64, 1], strides = [1, 1]} : vector<128x1xf32> to vector<64x1xf32>
      %31 = arith.addf %27, %30 : vector<64x1xf32>
      %cst_24 = arith.constant 0.001953125 : f32
      %32 = vector.broadcast %cst_24 : f32 to vector<64x1xf32>
      %33 = arith.mulf %29, %32 : vector<64x1xf32>
      %cst_25 = arith.constant 0.001953125 : f32
      %34 = vector.broadcast %cst_25 : f32 to vector<64x1xf32>
      %35 = arith.mulf %31, %34 : vector<64x1xf32>
      %36 = arith.mulf %33, %33 : vector<64x1xf32>
      %37 = arith.subf %35, %36 : vector<64x1xf32>
      %cst_26 = arith.constant 0.000000e+00 : f32
      %38 = vector.broadcast %cst_26 : f32 to vector<64x1xf32>
      %39 = arith.maximumf %37, %38 : vector<64x1xf32>
      %c0_27 = arith.constant 0 : index
      %c0_28 = arith.constant 0 : index
      %40 = vector.load %arg6[%c0_27, %c0_28] : memref<64x1xf32, #tpu.memory_space<vmem>>, vector<64x1xf32>
      %cst_29 = arith.constant 9.99999974E-6 : f32
      %41 = vector.broadcast %cst_29 : f32 to vector<64x1xf32>
      %42 = arith.addf %39, %41 : vector<64x1xf32>
      %43 = math.rsqrt %42 : vector<64x1xf32>
      %44 = arith.mulf %40, %43 : vector<64x1xf32>
      %c0_30 = arith.constant 0 : index
      %c0_31 = arith.constant 0 : index
      %45 = vector.load %arg7[%c0_30, %c0_31] : memref<64x1xf32, #tpu.memory_space<vmem>>, vector<64x1xf32>
      %46 = arith.mulf %33, %44 : vector<64x1xf32>
      %47 = arith.subf %45, %46 : vector<64x1xf32>
      %c0_32 = arith.constant 0 : index
      %c0_33 = arith.constant 0 : index
      %48 = vector.load %arg4[%c0_32, %c0_33] : memref<1x128xf32, #tpu.memory_space<vmem>>, vector<1x128xf32>
      %49 = vector.broadcast %47 : vector<64x1xf32> to vector<64x128xf32>
      %50 = vector.broadcast %48 : vector<1x128xf32> to vector<64x128xf32>
      %51 = arith.mulf %49, %50 : vector<64x128xf32>
      %c0_34 = arith.constant 0 : index
      %c0_35 = arith.constant 0 : index
      %52 = vector.load %arg5[%c0_34, %c0_35] : memref<1x128xf32, #tpu.memory_space<vmem>>, vector<1x128xf32>
      %53 = vector.broadcast %52 : vector<1x128xf32> to vector<64x128xf32>
      %54 = arith.addf %51, %53 : vector<64x128xf32>
      %c0_36 = arith.constant 0 : index
      %c0_37 = arith.constant 0 : index
      %55 = vector.load %arg8[%c0_36, %c0_37] : memref<128x128xf32, #tpu.memory_space<vmem>>, vector<64x128xf32>
      %56 = vector.broadcast %44 : vector<64x1xf32> to vector<64x128xf32>
      %57 = arith.mulf %56, %55 : vector<64x128xf32>
      %58 = arith.addf %57, %54 : vector<64x128xf32>
      %cst_38 = arith.constant 0.000000e+00 : f32
      %59 = vector.broadcast %cst_38 : f32 to vector<64x128xf32>
      %60 = arith.cmpf oge, %58, %59 : vector<64x128xf32>
      %cst_39 = arith.constant 0.00999999977 : f32
      %61 = vector.broadcast %cst_39 : f32 to vector<64x128xf32>
      %62 = arith.mulf %61, %58 : vector<64x128xf32>
      %63 = arith.select %60, %58, %62 : vector<64x128xi1>, vector<64x128xf32>
      %c0_40 = arith.constant 0 : index
      %c0_41 = arith.constant 0 : index
      %64 = vector.load %arg8[%c0_40, %c0_41] : memref<128x128xf32, #tpu.memory_space<vmem>>, vector<64x128xf32>
      tpu.vector_store %arg8[%c0_40, %c0_41], %63 {strides = array<i32>} : memref<128x128xf32, #tpu.memory_space<vmem>>, vector<64x128xf32>,
      %c64 = arith.constant 64 : index
      %c0_42 = arith.constant 0 : index
      %65 = vector.load %arg8[%c64, %c0_42] : memref<128x128xf32, #tpu.memory_space<vmem>>, vector<64x128xf32>
      %66 = vector.broadcast %44 : vector<64x1xf32> to vector<64x128xf32>
      %67 = arith.mulf %66, %65 : vector<64x128xf32>
      %68 = arith.addf %67, %54 : vector<64x128xf32>
      %cst_43 = arith.constant 0.000000e+00 : f32
      %69 = vector.broadcast %cst_43 : f32 to vector<64x128xf32>
      %70 = arith.cmpf oge, %68, %69 : vector<64x128xf32>
      %cst_44 = arith.constant 0.00999999977 : f32
      %71 = vector.broadcast %cst_44 : f32 to vector<64x128xf32>
      %72 = arith.mulf %71, %68 : vector<64x128xf32>
      %73 = arith.select %70, %68, %72 : vector<64x128xi1>, vector<64x128xf32>
      %c64_45 = arith.constant 64 : index
      %c0_46 = arith.constant 0 : index
      %74 = vector.load %arg8[%c64_45, %c0_46] : memref<128x128xf32, #tpu.memory_space<vmem>>, vector<64x128xf32>
      tpu.vector_store %arg8[%c64_45, %c0_46], %73 {strides = array<i32>} : memref<128x128xf32, #tpu.memory_space<vmem>>, vector<64x128xf32>,
    } else {
    }
    return
  }
  func.func @transform_0(%arg0: i32, %arg1: i32) -> (i32, i32) {
    %c0_i32 = arith.constant 0 : i32
    %c0_i32_0 = arith.constant 0 : i32
    return %c0_i32, %arg1 : i32, i32
  }
  func.func @transform_1(%arg0: i32, %arg1: i32) -> (i32, i32) {
    %c0_i32 = arith.constant 0 : i32
    return %arg1, %arg0 : i32, i32
  }
  func.func @transform_2(%arg0: i32, %arg1: i32) -> (i32, i32) {
    %c0_i32 = arith.constant 0 : i32
    %c0_i32_0 = arith.constant 0 : i32
    return %c0_i32, %arg0 : i32, i32
  }
  func.func @transform_3(%arg0: i32, %arg1: i32) -> (i32, i32) {
    %c0_i32 = arith.constant 0 : i32
    %c0_i32_0 = arith.constant 0 : i32
    return %c0_i32, %arg0 : i32, i32
  }
  func.func @transform_4(%arg0: i32, %arg1: i32) -> (i32, i32) {
    %c0_i32 = arith.constant 0 : i32
    %c0_i32_0 = arith.constant 0 : i32
    %c0_i32_1 = arith.constant 0 : i32
    return %c0_i32, %c0_i32_0 : i32, i32
  }
  func.func @transform_5(%arg0: i32, %arg1: i32) -> (i32, i32) {
    %c0_i32 = arith.constant 0 : i32
    %c0_i32_0 = arith.constant 0 : i32
    %c0_i32_1 = arith.constant 0 : i32
    return %c0_i32, %c0_i32_0 : i32, i32
  }
  func.func @transform_6(%arg0: i32, %arg1: i32) -> (i32, i32) {
    %c0_i32 = arith.constant 0 : i32
    %c0_i32_0 = arith.constant 0 : i32
    return %c0_i32, %arg0 : i32, i32
  }
}

</mosaic_0001>

<bundles_post_ra>
// kernel: mlp_forward.1
= control target key start
LH: loop header
LB: loop body
LE: loop exit
PB: predicated region body
PF: predicated region fallthrough
CT: control target
= control target key end

     0   :  { %11 = vsyncpa [#allocation5], 0  ;;  %s1734_s0 = inlined_call_operand.hbm [shape: f32[128,256], index: 0, kind: input, shape index: {}]   ;;  %s1735_s1 = inlined_call_operand.vmem [shape: bf16[256,128], index: 1, kind: input, shape index: {}]   ;;  %s1736_s2 = inlined_call_operand.vmem [shape: f32[1,128], index: 2, kind: input, shape index: {}]   ;;  %s1737_s3 = inlined_call_operand.vmem [shape: f32[1,128], index: 3, kind: input, shape index: {}]   ;;  %s1738_s4 = inlined_call_operand.vmem [shape: f32[64,1], index: 4, kind: input, shape index: {}]   ;;  %s1739_s5 = inlined_call_operand.vmem [shape: f32[64,1], index: 5, kind: input, shape index: {}]   ;;  %s1740_s6 = inlined_call_operand.hbm [shape: f32[128,128], index: 6, kind: output, shape index: {}]  }
   0x1   :  { %12 = vsyncpa [#allocation6], 0  ;;  %s1212_s21 = smov [#allocation4]   ;;  %s1164_s25 = scalar_lea.hbm %s1734_s0, 4096 }
   0x2   :  { %s18_s22 = sshll.u32 %s1212_s21, 4  ;;  %p1165_p0 = scmp.ne.s32.totalorder %s1734_s0, %s1164_s25  ;;  %s19_s22 = int_to_ptr.vmem [resolvable:$true] %s18_s22 }
   0x3   :  { %p1168_p1 = scmp.lt.u32.totalorder %s1164_s25, %s1734_s0 }
   0x5   :  { %p1170_p2 = pnand %p1168_p1, %p1165_p0 }
   0x7   :  { %1173 = shalt.err (!%p1170_p2)
}
   0x8   :  { %s1174_s30 = scalar_lea.vmem %s19_s22, 4096  ;;  %p1179_p4 = scmp.lt.s32.totalorder %s19_s22, %s19_s22 }
   0x9   :  { %p1175_p3 = scmp.ne.s32.totalorder %s19_s22, %s1174_s30  ;;  %p1180_p5 = scmp.lt.s32.totalorder %s1174_s30, %s1174_s30 }
   0xb   :  { %p1181_p6 = por %p1180_p5, %p1179_p4 }
   0xd   :  { %p1182_p7 = pnand %p1181_p6, %p1175_p3 }
   0xf   :  { %1185 = shalt.err (!%p1182_p7)
}
  0x10   :  { %s1213_s7 = smov 256   ;;  %s1214_s8 = smov 16  }
  0x11   :  { %24 = dma.hbm_to_vmem [thread:$0]  %s1734_s0, 4096, %s19_s22, [#allocation5], %s1213_s7, %s1213_s7, %s1214_s8  }
  0x12   :  { %1208 = dma.done.wait [#allocation5], 4096  }
  0x13   :  { %1209 = vsyncadd [#allocation5], 4294963200  ;;  %vm59_vm0 = vcmask 7168   ;;  %v1215_v0 = vmov 0.0   ;;  %v1299_v1 = vld [vmem:[#allocation4 + $0x20] sm:$0xff]  ;;  %v1301_v2 = vld [vmem:[#allocation4 + $0x28] sm:$0xff] }
  0x14   :  { %62 = vst.msk [vmem:[#allocation2 + $0x10] sm:$0xff] %vm59_vm0, %v1215_v0  ;;  %60 = vst.msk [vmem:[#allocation2] sm:$0xff] %vm59_vm0, %v1215_v0  ;;  %v1303_v3 = vld [vmem:[#allocation4] sm:$0xff]  ;;  %v435_v4 = vadd.f32 %v1301_v2, %v1299_v1  ;;  %v1307_v5 = vld [vmem:[#allocation4 + $0x8] sm:$0xff] }
  0x15   :  { %61 = vst.msk [vmem:[#allocation2 + $0x8] sm:$0xff] %vm59_vm0, %v1215_v0  ;;  %63 = vst.msk [vmem:[#allocation2 + $0x18] sm:$0xff] %vm59_vm0, %v1215_v0  ;;  %v1309_v6 = vld [vmem:[#allocation4 + $0x30] sm:$0xff]  ;;  %v1311_v7 = vld [vmem:[#allocation4 + $0x38] sm:$0xff]  ;;  %v429_v8 = vadd.f32 %v1307_v5, %v1303_v3  ;;  %v526_v62 = vmul.f32 %v1303_v3, %v1303_v3  ;;  %v527_v63 = vmul.f32 %v1307_v5, %v1307_v5 }
  0x16   :  { %64 = vst.msk [vmem:[#allocation2 + $0x20] sm:$0xff] %vm59_vm0, %v1215_v0  ;;  %65 = vst.msk [vmem:[#allocation2 + $0x28] sm:$0xff] %vm59_vm0, %v1215_v0  ;;  %v1315_v9 = vld [vmem:[#allocation4 + $0x10] sm:$0xff]  ;;  %v1317_v10 = vld [vmem:[#allocation4 + $0x18] sm:$0xff]  ;;  %436 = vadd.xlane.f32.xlu1 %v435_v4  ;;  %v438_v11 = vadd.f32 %v1311_v7, %v1309_v6 }
  0x17   :  { %66 = vst.msk [vmem:[#allocation2 + $0x30] sm:$0xff] %vm59_vm0, %v1215_v0  ;;  %67 = vst.msk [vmem:[#allocation2 + $0x38] sm:$0xff] %vm59_vm0, %v1215_v0  ;;  %430 = vadd.xlane.f32.xlu0 %v429_v8  ;;  %v432_v12 = vadd.f32 %v1317_v10, %v1315_v9  ;;  %v1323_v13 = vld [vmem:[#allocation4 + $0x50] sm:$0xff]  ;;  %v1325_v14 = vld [vmem:[#allocation4 + $0x58] sm:$0xff]  ;;  %v141_v39 = vpack.c.bf16 %v1317_v10, %v1307_v5  ;;  %v528_v59 = vmul.f32 %v1315_v9, %v1315_v9 }
  0x18   :  { %68 = vst.msk [vmem:[#allocation2 + $0x40] sm:$0xff] %vm59_vm0, %v1215_v0  ;;  %69 = vst.msk [vmem:[#allocation2 + $0x48] sm:$0xff] %vm59_vm0, %v1215_v0  ;;  %v1327_v15 = vld [vmem:[#allocation4 + $0x40] sm:$0xff]  ;;  %v1329_v16 = vld [vmem:[#allocation4 + $0x48] sm:$0xff]  ;;  %v444_v17 = vadd.f32 %v1325_v14, %v1323_v13  ;;  %v529_v60 = vmul.f32 %v1317_v10, %v1317_v10  ;;  %v532_v10 = vmul.f32 %v1309_v6, %v1309_v6 }
  0x19   :  { %70 = vst.msk [vmem:[#allocation2 + $0x50] sm:$0xff] %vm59_vm0, %v1215_v0  ;;  %71 = vst.msk [vmem:[#allocation2 + $0x58] sm:$0xff] %vm59_vm0, %v1215_v0  ;;  %v441_v18 = vadd.f32 %v1329_v16, %v1327_v15  ;;  %v1335_v19 = vld [vmem:[#allocation4 + $0x70] sm:$0xff]  ;;  %v1337_v20 = vld [vmem:[#allocation4 + $0x78] sm:$0xff]  ;;  %316 = vmatprep.mubr.bf16.mxu0 %v141_v39  ;;  %v533_v5 = vmul.f32 %v1311_v7, %v1311_v7 }
  0x1a   :  { %72 = vst.msk [vmem:[#allocation2 + $0x60] sm:$0xff] %vm59_vm0, %v1215_v0  ;;  %73 = vst.msk [vmem:[#allocation2 + $0x68] sm:$0xff] %vm59_vm0, %v1215_v0  ;;  %439 = vadd.xlane.f32.xlu1 %v438_v11  ;;  %v1339_v21 = vld [vmem:[#allocation4 + $0x60] sm:$0xff]  ;;  %v1341_v22 = vld [vmem:[#allocation4 + $0x68] sm:$0xff]  ;;  %v450_v25 = vadd.f32 %v1337_v20, %v1335_v19  ;;  %v561_v8 = vadd.f32 %v529_v60, %v528_v59  ;;  %v558_v11 = vadd.f32 %v527_v63, %v526_v62 }
  0x1b   :  { %74 = vst.msk [vmem:[#allocation2 + $0x70] sm:$0xff] %vm59_vm0, %v1215_v0  ;;  %75 = vst.msk [vmem:[#allocation2 + $0x78] sm:$0xff] %vm59_vm0, %v1215_v0  ;;  %433 = vadd.xlane.f32.xlu0 %v432_v12  ;;  %v1343_v23 = vld [vmem:[#allocation4 + $0x90] sm:$0xff]  ;;  %v1345_v24 = vld [vmem:[#allocation4 + $0x98] sm:$0xff]  ;;  %v447_v29 = vadd.f32 %v1341_v22, %v1339_v21  ;;  %v530_v12 = vmul.f32 %v1299_v1, %v1299_v1  ;;  %v140_v59 = vpack.c.bf16 %v1315_v9, %v1303_v3 }
  0x1c   :  { %76 = vst.msk [vmem:[#allocation3] sm:$0xff] %vm59_vm0, %v1215_v0  ;;  %77 = vst.msk [vmem:[#allocation3 + $0x8] sm:$0xff] %vm59_vm0, %v1215_v0  ;;  %v1349_v26 = vld [vmem:[#allocation4 + $0x80] sm:$0xff]  ;;  %v1351_v27 = vld [vmem:[#allocation4 + $0x88] sm:$0xff]  ;;  %v456_v34 = vadd.f32 %v1345_v24, %v1343_v23  ;;  %v143_v63 = vpack.c.bf16 %v1311_v7, %v1301_v2 }
  0x1d   :  { %78 = vst.msk [vmem:[#allocation3 + $0x10] sm:$0xff] %vm59_vm0, %v1215_v0  ;;  %79 = vst.msk [vmem:[#allocation3 + $0x18] sm:$0xff] %vm59_vm0, %v1215_v0  ;;  %v1132_v28 = vld [vmem:[%s1735_s1 + $0x40] sm:$0xff]   ;;  %v1134_v31 = vld [vmem:[%s1735_s1 + $0x48] sm:$0xff]   ;;  %v453_v37 = vadd.f32 %v1351_v27, %v1349_v26  ;;  %v149_v41 = vpack.c.bf16 %v1345_v24, %v1351_v27  ;;  %v542_v60 = vmul.f32 %v1349_v26, %v1349_v26 }
  0x1e   :  { %80 = vst.msk [vmem:[#allocation3 + $0x20] sm:$0xff] %vm59_vm0, %v1215_v0  ;;  %81 = vst.msk [vmem:[#allocation3 + $0x28] sm:$0xff] %vm59_vm0, %v1215_v0  ;;  %445 = vadd.xlane.f32.xlu1 %v444_v17  ;;  %v1133_v30 = vld [vmem:[%s1735_s1] sm:$0xff]   ;;  %1042 = vmatprep.subr.bf16.mxu0 %v1132_v28  ;;  %v1364_v32 = vld [vmem:[#allocation4 + $0xb0] sm:$0xff]  ;;  %v531_v17 = vmul.f32 %v1301_v2, %v1301_v2  ;;  %v148_v62 = vpack.c.bf16 %v1343_v23, %v1349_v26 }
  0x1f   :  { %82 = vst.msk [vmem:[#allocation3 + $0x30] sm:$0xff] %vm59_vm0, %v1215_v0  ;;  %83 = vst.msk [vmem:[#allocation3 + $0x38] sm:$0xff] %vm59_vm0, %v1215_v0  ;;  %442 = vadd.xlane.f32.xlu0 %v441_v18  ;;  %v1366_v33 = vld [vmem:[#allocation4 + $0xb8] sm:$0xff]  ;;  %1106 = vmatprep.subr.bf16.mxu1 %v1132_v28  ;;  %v1370_v35 = vld [vmem:[#allocation4 + $0xa0] sm:$0xff]  ;;  %v567_v28 = vadd.f32 %v533_v5, %v532_v10  ;;  %v548_v9 = vmul.f32 %v1364_v32, %v1364_v32 }
  0x20   :  { %84 = vst.msk [vmem:[#allocation3 + $0x40] sm:$0xff] %vm59_vm0, %v1215_v0  ;;  %85 = vst.msk [vmem:[#allocation3 + $0x48] sm:$0xff] %vm59_vm0, %v1215_v0  ;;  %v1372_v36 = vld [vmem:[#allocation4 + $0xa8] sm:$0xff]  ;;  %1043 = vmatpush3.bf16.msra.mxu0 %v1133_v30  ;;  %1114 = vmatpush3.bf16.msra.mxu1 %v1133_v30  ;;  %v1136_v40 = vld [vmem:[%s1735_s1 + $0x50] sm:$0xff]   ;;  %v462_v44 = vadd.f32 %v1366_v33, %v1364_v32  ;;  %v537_v30 = vmul.f32 %v1325_v14, %v1325_v14 }
  0x21   :  { %86 = vst.msk [vmem:[#allocation3 + $0x50] sm:$0xff] %vm59_vm0, %v1215_v0  ;;  %87 = vst.msk [vmem:[#allocation3 + $0x58] sm:$0xff] %vm59_vm0, %v1215_v0  ;;  %v1135_v38 = vld [vmem:[%s1735_s1 + $0x8] sm:$0xff]   ;;  %1044 = vmatprep.subr.bf16.mxu0 %v1134_v31  ;;  %v1386_v42 = vld [vmem:[#allocation4 + $0xd0] sm:$0xff]  ;;  %1107 = vmatprep.subr.bf16.mxu1 %v1134_v31  ;;  %v459_v47 = vadd.f32 %v1372_v36, %v1370_v35  ;;  %v564_v31 = vadd.f32 %v531_v17, %v530_v12 }
  0x22   :  { %88 = vst.msk [vmem:[#allocation3 + $0x60] sm:$0xff] %vm59_vm0, %v1215_v0  ;;  %89 = vst.msk [vmem:[#allocation3 + $0x68] sm:$0xff] %vm59_vm0, %v1215_v0  ;;  %451 = vadd.xlane.f32.xlu1 %v450_v25  ;;  %v1388_v43 = vld [vmem:[#allocation4 + $0xd8] sm:$0xff]  ;;  %v1392_v45 = vld [vmem:[#allocation4 + $0xc0] sm:$0xff]  ;;  %348 = vmatprep.mubr.bf16.mxu1 %v149_v41  ;;  %v541_v41 = vmul.f32 %v1337_v20, %v1337_v20  ;;  %v547_v2 = vmul.f32 %v1372_v36, %v1372_v36 }
  0x23   :  { %90 = vst.msk [vmem:[#allocation3 + $0x70] sm:$0xff] %vm59_vm0, %v1215_v0  ;;  %91 = vst.msk [vmem:[#allocation3 + $0x78] sm:$0xff] %vm59_vm0, %v1215_v0  ;;  %448 = vadd.xlane.f32.xlu0 %v447_v29  ;;  %v1394_v46 = vld [vmem:[#allocation4 + $0xc8] sm:$0xff]  ;;  %v1137_v48 = vld [vmem:[%s1735_s1 + $0x10] sm:$0xff]   ;;  %v468_v52 = vadd.f32 %v1388_v43, %v1386_v42  ;;  %v536_v29 = vmul.f32 %v1323_v13, %v1323_v13  ;;  %v552_v26 = vmul.f32 %v1386_v42, %v1386_v42 }
  0x24   :  { %1045 = vmatpush3.bf16.msra.mxu0 %v1135_v38  ;;  %1115 = vmatpush3.bf16.msra.mxu1 %v1135_v38  ;;  %v1138_v49 = vld [vmem:[%s1735_s1 + $0x58] sm:$0xff]   ;;  %v1404_v50 = vld [vmem:[#allocation4 + $0xf0] sm:$0xff]  ;;  %v1410_v53 = vld [vmem:[#allocation4 + $0xe0] sm:$0xff]  ;;  %v465_v55 = vadd.f32 %v1394_v46, %v1392_v45  ;;  %v550_v10 = vmul.f32 %v1392_v45, %v1392_v45  ;;  %v150_v5 = vpack.c.bf16 %v1364_v32, %v1370_v35 }
  0x25   :  { %1046 = vmatprep.subr.bf16.mxu0 %v1136_v40  ;;  %v1406_v51 = vld [vmem:[#allocation4 + $0xf8] sm:$0xff]  ;;  %1108 = vmatprep.subr.bf16.mxu1 %v1136_v40  ;;  %v1412_v54 = vld [vmem:[#allocation4 + $0xe8] sm:$0xff]  ;;  %v1140_v57 = vld [vmem:[%s1735_s1 + $0x60] sm:$0xff]   ;;  %v540_v40 = vmul.f32 %v1335_v19, %v1335_v19  ;;  %v153_v12 = vpack.c.bf16 %v1388_v43, %v1394_v46  ;;  %v554_v32 = vmul.f32 %v1410_v53, %v1410_v53 }
  0x26   :  { %457 = vadd.xlane.f32.xlu1 %v456_v34  ;;  %v1139_v56 = vld [vmem:[%s1735_s1 + $0x18] sm:$0xff]   ;;  %v474_v58 = vadd.f32 %v1406_v51, %v1404_v50  ;;  %v471_v61 = vadd.f32 %v1412_v54, %v1410_v53  ;;  %v1141_v0 = vld [vmem:[%s1735_s1 + $0x20] sm:$0xff]   ;;  %v1142_v4 = vld [vmem:[%s1735_s1 + $0x68] sm:$0xff]   ;;  %v534_v34 = vmul.f32 %v1327_v15, %v1327_v15 }
  0x27   :  { %454 = vadd.xlane.f32.xlu0 %v453_v37  ;;  %v1143_v18 = vld [vmem:[%s1735_s1 + $0x28] sm:$0xff]   ;;  %v1144_v25 = vld [vmem:[%s1735_s1 + $0x70] sm:$0xff]   ;;  %v535_v37 = vmul.f32 %v1329_v16, %v1329_v16  ;;  %v1146_v39 = vld [vmem:[%s1735_s1 + $0x78] sm:$0xff]  }
  0x28   :  { %1047 = vmatpush3.bf16.msra.mxu0 %v1137_v48  ;;  %1116 = vmatpush3.bf16.msra.mxu1 %v1137_v48  ;;  %v1145_v38 = vld [vmem:[%s1735_s1 + $0x30] sm:$0xff]   ;;  %v539_v48 = vmul.f32 %v1341_v22, %v1341_v22 }
  0x29   :  { %1048 = vmatprep.subr.bf16.mxu0 %v1138_v49  ;;  %1109 = vmatprep.subr.bf16.mxu1 %v1138_v49  ;;  %v570_v49 = vadd.f32 %v535_v37, %v534_v34  ;;  %v418_v34 = vld [vmem:[#allocation2 + $0x28] sm:$0xff]  ;;  %v417_v37 = vld [vmem:[#allocation2 + $0x20] sm:$0xff] }
  0x2a   :  { %463 = vadd.xlane.f32.xlu1 %v462_v44  ;;  %v573_v44 = vadd.f32 %v537_v30, %v536_v29  ;;  %v416_v30 = vld [vmem:[#allocation2 + $0x18] sm:$0xff] }
  0x2b   :  { %460 = vadd.xlane.f32.xlu0 %v459_v47  ;;  %v538_v47 = vmul.f32 %v1339_v21, %v1339_v21 }
  0x2c   :  { %1049 = vmatpush3.bf16.msra.mxu0 %v1139_v56  ;;  %1117 = vmatpush3.bf16.msra.mxu1 %v1139_v56 }
  0x2d   :  { %1050 = vmatprep.subr.bf16.mxu0 %v1140_v57  ;;  %1110 = vmatprep.subr.bf16.mxu1 %v1140_v57  ;;  %v576_v56 = vadd.f32 %v539_v48, %v538_v47  ;;  %v544_v57 = vmul.f32 %v1343_v23, %v1343_v23  ;;  %v546_v23 = vmul.f32 %v1370_v35, %v1370_v35  ;;  %v419_v47 = vld [vmem:[#allocation2 + $0x30] sm:$0xff] }
  0x2e   :  { %469 = vadd.xlane.f32.xlu1 %v468_v52  ;;  %v1147_v52 = vld [vmem:[%s1735_s1 + $0x38] sm:$0xff]   ;;  %v144_v35 = vpack.c.bf16 %v1323_v13, %v1327_v15  ;;  %v146_v13 = vpack.c.bf16 %v1335_v19, %v1339_v21  ;;  %v154_v15 = vpack.c.bf16 %v1404_v50, %v1410_v53 }
  0x2f   :  { %466 = vadd.xlane.f32.xlu0 %v465_v55  ;;  %v579_v55 = vadd.f32 %v541_v41, %v540_v40 }
  0x30   :  { %1051 = vmatpush3.bf16.msra.mxu0 %v1141_v0  ;;  %1118 = vmatpush3.bf16.msra.mxu1 %v1141_v0  ;;  %v549_v0 = vmul.f32 %v1366_v33, %v1366_v33 }
  0x31   :  { %1052 = vmatprep.subr.bf16.mxu0 %v1142_v4  ;;  %1111 = vmatprep.subr.bf16.mxu1 %v1142_v4  ;;  %v142_v4 = vpack.c.bf16 %v1309_v6, %v1299_v1  ;;  %v556_v1 = vmul.f32 %v1404_v50, %v1404_v50  ;;  %v557_v6 = vmul.f32 %v1406_v51, %v1406_v51 }
  0x32   :  { %475 = vadd.xlane.f32.xlu1 %v474_v58  ;;  %v545_v58 = vmul.f32 %v1345_v24, %v1345_v24  ;;  %v151_v24 = vpack.c.bf16 %v1366_v33, %v1372_v36  ;;  %v591_v7 = vadd.f32 %v549_v0, %v548_v9  ;;  %v553_v33 = vmul.f32 %v1388_v43, %v1388_v43 }
  0x33   :  { %472 = vadd.xlane.f32.xlu0 %v471_v61  ;;  %v543_v61 = vmul.f32 %v1351_v27, %v1351_v27  ;;  %v551_v36 = vmul.f32 %v1394_v46, %v1394_v46  ;;  %v152_v46 = vpack.c.bf16 %v1386_v42, %v1392_v45  ;;  %v1216_v42 = vmov 0  }
  0x34   :  { %1053 = vmatpush3.bf16.msra.mxu0 %v1143_v18  ;;  %1119 = vmatpush3.bf16.msra.mxu1 %v1143_v18  ;;  %v585_v3 = vadd.f32 %v545_v58, %v544_v57  ;;  %v597_v17 = vadd.f32 %v553_v33, %v552_v26  ;;  %v421_v57 = vld [vmem:[#allocation2 + $0x40] sm:$0xff] }
  0x35   :  { %1054 = vmatprep.subr.bf16.mxu0 %v1144_v25  ;;  %1112 = vmatprep.subr.bf16.mxu1 %v1144_v25  ;;  %v582_v27 = vadd.f32 %v543_v61, %v542_v60  ;;  %v594_v18 = vadd.f32 %v551_v36, %v550_v10  ;;  %v147_v25 = vpack.c.bf16 %v1337_v20, %v1341_v22  ;;  %v415_v20 = vld [vmem:[#allocation2 + $0x10] sm:$0xff]  ;;  %v413_v22 = vld [vmem:[#allocation2] sm:$0xff] }
  0x36   :  { %562 = vadd.xlane.f32.xlu1 %v561_v8  ;;  %v588_v8 = vadd.f32 %v547_v2, %v546_v23  ;;  %1131 = vset.pattern.permute.xlu0 %v1216_v42  ;;  %v425_v23 = vld [vmem:[#allocation2 + $0x60] sm:$0xff] }
  0x37   :  { %559 = vadd.xlane.f32.xlu0 %v558_v11  ;;  %v145_v11 = vpack.c.bf16 %v1325_v14, %v1329_v16  ;;  %v555_v14 = vmul.f32 %v1412_v54, %v1412_v54  ;;  %v603_v16 = vadd.f32 %v557_v6, %v556_v1  ;;  %1130 = vset.pattern.permute.xlu1 %v1216_v42 }
  0x38   :  { %1055 = vmatpush3.bf16.msra.mxu0 %v1145_v38  ;;  %1120 = vmatpush3.bf16.msra.mxu1 %v1145_v38 }
  0x39   :  { %1056 = vmatprep.subr.bf16.mxu0 %v1146_v39  ;;  %1113 = vmatprep.subr.bf16.mxu1 %v1146_v39  ;;  %v600_v43 = vadd.f32 %v555_v14, %v554_v32  ;;  %v513_v14 = vld [vmem:[#allocation3 + $0x18] sm:$0xff] }
  0x3a   :  { %568 = vadd.xlane.f32.xlu1 %v567_v28  ;;  %v155_v28 = vpack.c.bf16 %v1406_v51, %v1412_v54 }
  0x3b   :  { %565 = vadd.xlane.f32.xlu0 %v564_v31  ;;  %v414_v31 = vld [vmem:[#allocation2 + $0x8] sm:$0xff] }
  0x3c   :  { %1057 = vmatpush3.bf16.msra.mxu0 %v1147_v52  ;;  %1121 = vmatpush3.bf16.msra.mxu1 %v1147_v52 }
  0x3e   :  { %574 = vadd.xlane.f32.xlu1 %v573_v44  ;;  %v420_v44 = vld [vmem:[#allocation2 + $0x38] sm:$0xff] }
  0x3f   :  { %571 = vadd.xlane.f32.xlu0 %v570_v49  ;;  %317 = vmatmul.mubr.bf16.vlgmr.msra.gmra.mrb[0].mxu0 %v140_v59 }
  0x40   :  { %349 = vmatmul.mubr.bf16.vlgmr.msra.gmra.mrb[0].mxu1 %v148_v62  ;;  %324 = vmatprep.mubr.bf16.mxu0 %v143_v63  ;;  %v424_v62 = vld [vmem:[#allocation2 + $0x58] sm:$0xff]  ;;  %v423_v63 = vld [vmem:[#allocation2 + $0x50] sm:$0xff] }
  0x41   :  { %356 = vmatprep.mubr.bf16.mxu1 %v151_v24 }
  0x42   :  { %580 = vadd.xlane.f32.xlu1 %v579_v55 }
  0x43   :  { %577 = vadd.xlane.f32.xlu0 %v576_v56  ;;  %v422_v56 = vld [vmem:[#allocation2 + $0x48] sm:$0xff] }
  0x46   :  { %586 = vadd.xlane.f32.xlu1 %v585_v3 }
  0x47   :  { %583 = vadd.xlane.f32.xlu0 %v582_v27  ;;  %325 = vmatmul.mubr.bf16.gmra.mrb[4].mxu0 %v142_v4  ;;  %v426_v27 = vld [vmem:[#allocation2 + $0x68] sm:$0xff]  ;;  %v428_v4 = vld [vmem:[#allocation2 + $0x78] sm:$0xff] }
  0x48   :  { %357 = vmatmul.mubr.bf16.gmra.mrb[4].mxu1 %v150_v5  ;;  %332 = vmatprep.mubr.bf16.mxu0 %v145_v11 }
  0x49   :  { %364 = vmatprep.mubr.bf16.mxu1 %v153_v12  ;;  %v511_v12 = vld [vmem:[#allocation3 + $0x8] sm:$0xff] }
  0x4a   :  { %592 = vadd.xlane.f32.xlu1 %v591_v7 }
  0x4b   :  { %589 = vadd.xlane.f32.xlu0 %v588_v8  ;;  %v427_v8 = vld [vmem:[#allocation2 + $0x70] sm:$0xff] }
  0x4e   :  { %598 = vadd.xlane.f32.xlu1 %v597_v17  ;;  %v510_v17 = vld [vmem:[#allocation3] sm:$0xff] }
  0x4f   :  { %595 = vadd.xlane.f32.xlu0 %v594_v18  ;;  %333 = vmatmul.mubr.bf16.gmra.mrb[8].mxu0 %v144_v35 }
  0x50   :  { %365 = vmatmul.mubr.bf16.gmra.mrb[8].mxu1 %v152_v46  ;;  %340 = vmatprep.mubr.bf16.mxu0 %v147_v25 }
  0x51   :  { %372 = vmatprep.mubr.bf16.mxu1 %v155_v28  ;;  %v515_v28 = vld [vmem:[#allocation3 + $0x28] sm:$0xff] }
  0x52   :  { %604 = vadd.xlane.f32.xlu1 %v603_v16  ;;  %v512_v16 = vld [vmem:[#allocation3 + $0x10] sm:$0xff] }
  0x53   :  { %601 = vadd.xlane.f32.xlu0 %v600_v43 }
  0x57   :  { %341 = vmatmul.mubr.bf16.gmra.mrb[12].mxu0 %v146_v13  ;;  %v514_v13 = vld [vmem:[#allocation3 + $0x20] sm:$0xff] }
  0x58   :  { %373 = vmatmul.mubr.bf16.gmra.mrb[12].mxu1 %v154_v15 }
  0xa3   :  { %v437_v45 = vpop.xlane.xlu1 %436 }
  0xa4   :  { %v479_v51 = vadd.f32 %v437_v45, %v415_v20  ;;  %v431_v54 = vpop.xlane.xlu0 %430  ;;  %v517_v45 = vld [vmem:[#allocation3 + $0x38] sm:$0xff] }
  0xa5   :  { %v477_v29 = vadd.f32 %v431_v54, %v413_v22 }
  0xa6   :  { %496 = vst.msk [vmem:[#allocation2 + $0x10] sm:$0xff] %vm59_vm0, %v479_v51  ;;  %v516_v51 = vld [vmem:[#allocation3 + $0x30] sm:$0xff] }
  0xa7   :  { %494 = vst.msk [vmem:[#allocation2] sm:$0xff] %vm59_vm0, %v477_v29  ;;  %v440_v19 = vpop.xlane.xlu1 %439 }
  0xa8   :  { %v480_v21 = vadd.f32 %v440_v19, %v416_v30  ;;  %v434_v50 = vpop.xlane.xlu0 %433  ;;  %v519_v19 = vld [vmem:[#allocation3 + $0x48] sm:$0xff] }
  0xa9   :  { %v478_v53 = vadd.f32 %v434_v50, %v414_v31 }
  0xaa   :  { %497 = vst.msk [vmem:[#allocation2 + $0x18] sm:$0xff] %vm59_vm0, %v480_v21  ;;  %v518_v21 = vld [vmem:[#allocation3 + $0x40] sm:$0xff] }
  0xab   :  { %495 = vst.msk [vmem:[#allocation2 + $0x8] sm:$0xff] %vm59_vm0, %v478_v53  ;;  %v446_v38 = vpop.xlane.xlu1 %445 }
  0xac   :  { %v482_v39 = vadd.f32 %v446_v38, %v418_v34  ;;  %v443_v40 = vpop.xlane.xlu0 %442  ;;  %v521_v38 = vld [vmem:[#allocation3 + $0x58] sm:$0xff] }
  0xad   :  { %v481_v41 = vadd.f32 %v443_v40, %v417_v37  ;;  %v520_v40 = vld [vmem:[#allocation3 + $0x50] sm:$0xff] }
  0xae   :  { %499 = vst.msk [vmem:[#allocation2 + $0x28] sm:$0xff] %vm59_vm0, %v482_v39 }
  0xaf   :  { %498 = vst.msk [vmem:[#allocation2 + $0x20] sm:$0xff] %vm59_vm0, %v481_v41  ;;  %v452_v48 = vpop.xlane.xlu1 %451 }
  0xb0   :  { %v484_v49 = vadd.f32 %v452_v48, %v420_v44  ;;  %v449_v52 = vpop.xlane.xlu0 %448 }
  0xb1   :  { %v483_v55 = vadd.f32 %v449_v52, %v419_v47 }
  0xb2   :  { %501 = vst.msk [vmem:[#allocation2 + $0x38] sm:$0xff] %vm59_vm0, %v484_v49  ;;  %v642_v47 = vld [vmem:[#allocation2 + $0x8] sm:$0xff] }
  0xb3   :  { %500 = vst.msk [vmem:[#allocation2 + $0x30] sm:$0xff] %vm59_vm0, %v483_v55  ;;  %v458_v58 = vpop.xlane.xlu1 %457  ;;  %v641_v55 = vld [vmem:[#allocation2] sm:$0xff] }
  0xb4   :  { %v486_v59 = vadd.f32 %v458_v58, %v422_v56  ;;  %v455_v60 = vpop.xlane.xlu0 %454 }
  0xb5   :  { %v485_v61 = vadd.f32 %v455_v60, %v421_v57  ;;  %v523_v57 = vld [vmem:[#allocation3 + $0x68] sm:$0xff]  ;;  %v522_v60 = vld [vmem:[#allocation3 + $0x60] sm:$0xff] }
  0xb6   :  { %503 = vst.msk [vmem:[#allocation2 + $0x48] sm:$0xff] %vm59_vm0, %v486_v59 }
  0xb7   :  { %502 = vst.msk [vmem:[#allocation2 + $0x40] sm:$0xff] %vm59_vm0, %v485_v61  ;;  %v464_v24 = vpop.xlane.xlu1 %463 }
  0xb8   :  { %v488_v3 = vadd.f32 %v464_v24, %v424_v62  ;;  %v461_v9 = vpop.xlane.xlu0 %460  ;;  %v644_v24 = vld [vmem:[#allocation2 + $0x18] sm:$0xff] }
  0xb9   :  { %v487_v0 = vadd.f32 %v461_v9, %v423_v63  ;;  %v525_v63 = vld [vmem:[#allocation3 + $0x78] sm:$0xff] }
  0xba   :  { %505 = vst.msk [vmem:[#allocation2 + $0x58] sm:$0xff] %vm59_vm0, %v488_v3 }
  0xbb   :  { %504 = vst.msk [vmem:[#allocation2 + $0x50] sm:$0xff] %vm59_vm0, %v487_v0  ;;  %v470_v2 = vpop.xlane.xlu1 %469 }
  0xbc   :  { %v490_v7 = vadd.f32 %v470_v2, %v426_v27  ;;  %v467_v26 = vpop.xlane.xlu0 %466  ;;  %v524_v27 = vld [vmem:[#allocation3 + $0x70] sm:$0xff] }
  0xbd   :  { %v489_v33 = vadd.f32 %v467_v26, %v425_v23  ;;  %v650_v39 = vld [vmem:[#allocation2 + $0x48] sm:$0xff] }
  0xbe   :  { %507 = vst.msk [vmem:[#allocation2 + $0x68] sm:$0xff] %vm59_vm0, %v490_v7  ;;  %v649_v41 = vld [vmem:[#allocation2 + $0x40] sm:$0xff]  ;;  %v674_v52 = vadd.f32 %v650_v39, %v642_v47  ;;  %v643_v7 = vld [vmem:[#allocation2 + $0x10] sm:$0xff] }
  0xbf   :  { %506 = vst.msk [vmem:[#allocation2 + $0x60] sm:$0xff] %vm59_vm0, %v489_v33  ;;  %v476_v10 = vpop.xlane.xlu1 %475  ;;  %v673_v58 = vadd.f32 %v649_v41, %v641_v55 }
  0xc0   :  { %v492_v36 = vadd.f32 %v476_v10, %v428_v4  ;;  %v473_v5 = vpop.xlane.xlu0 %472  ;;  %v1567_v23 = vmul.f32 0.001953125, %v674_v52 }
  0xc1   :  { %v491_v11 = vadd.f32 %v473_v5, %v427_v8  ;;  %v652_v59 = vld [vmem:[#allocation2 + $0x58] sm:$0xff]  ;;  %v1569_v10 = vmul.f32 0.001953125, %v673_v58  ;;  %v646_v5 = vld [vmem:[#allocation2 + $0x28] sm:$0xff] }
  0xc2   :  { %509 = vst.msk [vmem:[#allocation2 + $0x78] sm:$0xff] %vm59_vm0, %v492_v36  ;;  %v651_v61 = vld [vmem:[#allocation2 + $0x50] sm:$0xff]  ;;  %v676_v2 = vadd.f32 %v652_v59, %v644_v24 }
  0xc3   :  { %508 = vst.msk [vmem:[#allocation2 + $0x70] sm:$0xff] %vm59_vm0, %v491_v11  ;;  %v563_v1 = vpop.xlane.xlu1 %562  ;;  %v675_v36 = vadd.f32 %v651_v61, %v643_v7 }
  0xc4   :  { %v607_v6 = vadd.f32 %v563_v1, %v511_v12  ;;  %v560_v18 = vpop.xlane.xlu0 %559 }
  0xc5   :  { %v606_v32 = vadd.f32 %v560_v18, %v510_v17  ;;  %v654_v3 = vld [vmem:[#allocation2 + $0x68] sm:$0xff] }
  0xc6   :  { %623 = vst.msk [vmem:[#allocation3 + $0x8] sm:$0xff] %vm59_vm0, %v607_v6  ;;  %v653_v26 = vld [vmem:[#allocation2 + $0x60] sm:$0xff]  ;;  %v678_v1 = vadd.f32 %v654_v3, %v646_v5 }
  0xc7   :  { %622 = vst.msk [vmem:[#allocation3] sm:$0xff] %vm59_vm0, %v606_v32  ;;  %v569_v35 = vpop.xlane.xlu1 %568  ;;  %v645_v6 = vld [vmem:[#allocation2 + $0x20] sm:$0xff] }
  0xc8   :  { %v609_v43 = vadd.f32 %v569_v35, %v513_v14  ;;  %v566_v46 = vpop.xlane.xlu0 %565  ;;  %v677_v14 = vadd.f32 %v653_v26, %v645_v6 }
  0xc9   :  { %v608_v25 = vadd.f32 %v566_v46, %v512_v16  ;;  %v706_v46 = vmul.f32 %v1567_v23, %v1567_v23 }
  0xca   :  { %625 = vst.msk [vmem:[#allocation3 + $0x18] sm:$0xff] %vm59_vm0, %v609_v43  ;;  %v655_v59 = vld [vmem:[#allocation2 + $0x70] sm:$0xff] }
  0xcb   :  { %624 = vst.msk [vmem:[#allocation3 + $0x10] sm:$0xff] %vm59_vm0, %v608_v25  ;;  %v575_v15 = vpop.xlane.xlu1 %574  ;;  %v1575_v25 = vmul.f32 0.001953125, %v676_v2 }
  0xcc   :  { %v611_v42 = vadd.f32 %v575_v15, %v515_v28  ;;  %v572_v20 = vpop.xlane.xlu0 %571  ;;  %v705_v15 = vmul.f32 %v1569_v10, %v1569_v10 }
  0xcd   :  { %v610_v22 = vadd.f32 %v572_v20, %v514_v13  ;;  %v658_v4 = vld [vmem:[#allocation3 + $0x8] sm:$0xff] }
  0xce   :  { %627 = vst.msk [vmem:[#allocation3 + $0x28] sm:$0xff] %vm59_vm0, %v611_v42  ;;  %v657_v12 = vld [vmem:[#allocation3] sm:$0xff] }
  0xcf   :  { %626 = vst.msk [vmem:[#allocation3 + $0x20] sm:$0xff] %vm59_vm0, %v610_v22  ;;  %v581_v54 = vpop.xlane.xlu1 %580  ;;  %v1579_v22 = vmul.f32 0.001953125, %v675_v36 }
  0xd0   :  { %v613_v29 = vadd.f32 %v581_v54, %v517_v45  ;;  %v578_v30 = vpop.xlane.xlu0 %577  ;;  %v656_v45 = vld [vmem:[#allocation2 + $0x78] sm:$0xff] }
  0xd1   :  { %v612_v31 = vadd.f32 %v578_v30, %v516_v51  ;;  %v660_v42 = vld [vmem:[#allocation3 + $0x18] sm:$0xff] }
  0xd2   :  { %629 = vst.msk [vmem:[#allocation3 + $0x38] sm:$0xff] %vm59_vm0, %v613_v29  ;;  %v659_v29 = vld [vmem:[#allocation3 + $0x10] sm:$0xff] }
  0xd3   :  { %628 = vst.msk [vmem:[#allocation3 + $0x30] sm:$0xff] %vm59_vm0, %v612_v31  ;;  %v587_v50 = vpop.xlane.xlu1 %586  ;;  %v1582_v31 = vmul.f32 0.001953125, %v678_v1 }
  0xd4   :  { %v615_v53 = vadd.f32 %v587_v50, %v519_v19  ;;  %v584_v34 = vpop.xlane.xlu0 %583  ;;  %v1585_v50 = vmul.f32 0.001953125, %v677_v14 }
  0xd5   :  { %v614_v37 = vadd.f32 %v584_v34, %v518_v21  ;;  %v662_v47 = vld [vmem:[#allocation3 + $0x28] sm:$0xff] }
  0xd6   :  { %631 = vst.msk [vmem:[#allocation3 + $0x48] sm:$0xff] %vm59_vm0, %v615_v53  ;;  %v648_v53 = vld [vmem:[#allocation2 + $0x38] sm:$0xff] }
  0xd7   :  { %630 = vst.msk [vmem:[#allocation3 + $0x40] sm:$0xff] %vm59_vm0, %v614_v37  ;;  %v593_v44 = vpop.xlane.xlu1 %592  ;;  %v680_v39 = vadd.f32 %v656_v45, %v648_v53  ;;  %v731_v53 = vld [vmem:[%s1738_s4 + $0x10] sm:$0xff] }
  0xd8   :  { %v617_v48 = vadd.f32 %v593_v44, %v521_v38  ;;  %v590_v49 = vpop.xlane.xlu0 %589  ;;  %v708_v38 = vmul.f32 %v1575_v25, %v1575_v25  ;;  %v707_v44 = vmul.f32 %v1579_v22, %v1579_v22 }
  0xd9   :  { %v616_v56 = vadd.f32 %v590_v49, %v520_v40  ;;  %v664_v7 = vld [vmem:[#allocation3 + $0x38] sm:$0xff] }
  0xda   :  { %633 = vst.msk [vmem:[#allocation3 + $0x58] sm:$0xff] %vm59_vm0, %v617_v48  ;;  %v663_v5 = vld [vmem:[#allocation3 + $0x30] sm:$0xff] }
  0xdb   :  { %632 = vst.msk [vmem:[#allocation3 + $0x50] sm:$0xff] %vm59_vm0, %v616_v56  ;;  %v599_v62 = vpop.xlane.xlu1 %598  ;;  %v710_v56 = vmul.f32 %v1582_v31, %v1582_v31 }
  0xdc   :  { %v619_v9 = vadd.f32 %v599_v62, %v523_v57  ;;  %v596_v0 = vpop.xlane.xlu0 %595  ;;  %v661_v57 = vld [vmem:[#allocation3 + $0x20] sm:$0xff] }
  0xdd   :  { %v618_v33 = vadd.f32 %v596_v0, %v522_v60  ;;  %v666_v8 = vld [vmem:[#allocation3 + $0x48] sm:$0xff]  ;;  %v647_v0 = vld [vmem:[#allocation2 + $0x30] sm:$0xff] }
  0xde   :  { %635 = vst.msk [vmem:[#allocation3 + $0x68] sm:$0xff] %vm59_vm0, %v619_v9  ;;  %v682_v11 = vadd.f32 %v666_v8, %v658_v4  ;;  %v665_v17 = vld [vmem:[#allocation3 + $0x40] sm:$0xff]  ;;  %v1595_v9 = vmul.f32 0.001953125, %v680_v39 }
  0xdf   :  { %634 = vst.msk [vmem:[#allocation3 + $0x60] sm:$0xff] %vm59_vm0, %v618_v33  ;;  %v605_v18 = vpop.xlane.xlu1 %604  ;;  %v681_v32 = vadd.f32 %v665_v17, %v657_v12  ;;  %v679_v33 = vadd.f32 %v655_v59, %v647_v0  ;;  %v762_v59 = vld [vmem:[%s1739_s5 + $0x8] sm:$0xff] }
  0xe0   :  { %v621_v16 = vadd.f32 %v605_v18, %v525_v63  ;;  %v602_v35 = vpop.xlane.xlu0 %601  ;;  %v698_v43 = vmul.f32 0.001953125, %v682_v11  ;;  %v709_v63 = vmul.f32 %v1585_v50, %v1585_v50 }
  0xe1   :  { %v620_v28 = vadd.f32 %v602_v35, %v524_v27  ;;  %v697_v13 = vmul.f32 0.001953125, %v681_v32  ;;  %v668_v20 = vld [vmem:[#allocation3 + $0x58] sm:$0xff]  ;;  %v712_v32 = vmul.f32 %v1595_v9, %v1595_v9 }
  0xe2   :  { %637 = vst.msk [vmem:[#allocation3 + $0x78] sm:$0xff] %vm59_vm0, %v621_v16  ;;  %v714_v51 = vsub.f32 %v698_v43, %v706_v46  ;;  %v684_v54 = vadd.f32 %v668_v20, %v660_v42  ;;  %v667_v30 = vld [vmem:[#allocation3 + $0x50] sm:$0xff]  ;;  %v1599_v16 = vmul.f32 0.001953125, %v679_v33  ;;  %v729_v42 = vld [vmem:[%s1738_s4] sm:$0xff] }
  0xe3   :  { %636 = vst.msk [vmem:[#allocation3 + $0x70] sm:$0xff] %vm59_vm0, %v620_v28  ;;  %v713_v19 = vsub.f32 %v697_v13, %v705_v15  ;;  %v683_v21 = vadd.f32 %v667_v30, %v659_v29  ;;  %v730_v13 = vld [vmem:[%s1738_s4 + $0x8] sm:$0xff]  ;;  %v735_v33 = vld [vmem:[%s1738_s4 + $0x30] sm:$0xff] }
  0xe4   :  { %v722_v34 = vmax.f32 %v714_v51, 0.0  ;;  %v700_v37 = vmul.f32 0.001953125, %v684_v54  ;;  %v711_v20 = vmul.f32 %v1599_v16, %v1599_v16 }
  0xe5   :  { %v721_v40 = vmax.f32 %v713_v19, 0.0  ;;  %v699_v41 = vmul.f32 0.001953125, %v683_v21  ;;  %v670_v48 = vld [vmem:[#allocation3 + $0x68] sm:$0xff]  ;;  %v732_v21 = vld [vmem:[%s1738_s4 + $0x18] sm:$0xff] }
  0xe6   :  { %v738_v49 = vadd.f32 1e-05, %v722_v34  ;;  %v716_v52 = vsub.f32 %v700_v37, %v708_v38  ;;  %v686_v55 = vadd.f32 %v670_v48, %v662_v47  ;;  %v669_v58 = vld [vmem:[#allocation3 + $0x60] sm:$0xff] }
  0xe7   :  { %v737_v60 = vadd.f32 1e-05, %v721_v40  ;;  %v715_v61 = vsub.f32 %v699_v41, %v707_v44  ;;  %v685_v62 = vadd.f32 %v669_v58, %v661_v57  ;;  %v734_v41 = vld [vmem:[%s1738_s4 + $0x28] sm:$0xff]  ;;  %v733_v44 = vld [vmem:[%s1738_s4 + $0x20] sm:$0xff] }
  0xe8   :  { %1148 = vrsqrt.f32 %v738_v49  ;;  %v724_v24 = vmax.f32 %v716_v52, 0.0  ;;  %v702_v3 = vmul.f32 0.001953125, %v686_v55  ;;  %v761_v58 = vld [vmem:[%s1739_s5] sm:$0xff] }
  0xe9   :  { %1150 = vrsqrt.f32 %v737_v60  ;;  %v723_v27 = vmax.f32 %v715_v61, 0.0  ;;  %v701_v2 = vmul.f32 0.001953125, %v685_v62  ;;  %v672_v26 = vld [vmem:[#allocation3 + $0x78] sm:$0xff] }
  0xea   :  { %v740_v4 = vadd.f32 1e-05, %v724_v24  ;;  %v718_v8 = vsub.f32 %v702_v3, %v710_v56  ;;  %v688_v36 = vadd.f32 %v672_v26, %v664_v7  ;;  %v671_v11 = vld [vmem:[#allocation3 + $0x70] sm:$0xff]  ;;  %v765_v26 = vld [vmem:[%s1739_s5 + $0x20] sm:$0xff] }
  0xeb   :  { %v739_v12 = vadd.f32 1e-05, %v723_v27  ;;  %v717_v17 = vsub.f32 %v701_v2, %v709_v63  ;;  %v687_v1 = vadd.f32 %v671_v11, %v663_v5  ;;  %v763_v63 = vld [vmem:[%s1739_s5 + $0x10] sm:$0xff]  ;;  %v764_v27 = vld [vmem:[%s1739_s5 + $0x18] sm:$0xff] }
  0xec   :  { %1152 = vrsqrt.f32 %v740_v4  ;;  %v726_v6 = vmax.f32 %v718_v8, 0.0  ;;  %v704_v18 = vmul.f32 0.001953125, %v688_v36  ;;  %v766_v36 = vld [vmem:[%s1739_s5 + $0x28] sm:$0xff]  ;;  %v767_v11 = vld [vmem:[%s1739_s5 + $0x30] sm:$0xff] }
  0xed   :  { %1154 = vrsqrt.f32 %v739_v12  ;;  %v725_v14 = vmax.f32 %v717_v17, 0.0  ;;  %v703_v28 = vmul.f32 0.001953125, %v687_v1 }
  0xee   :  { %v742_v35 = vadd.f32 1e-05, %v726_v6  ;;  %v720_v43 = vsub.f32 %v704_v18, %v712_v32 }
  0xef   :  { %v741_v46 = vadd.f32 1e-05, %v725_v14  ;;  %v719_v30 = vsub.f32 %v703_v28, %v711_v20 }
  0xf0   :  { %1156 = vrsqrt.f32 %v742_v35  ;;  %v728_v15 = vmax.f32 %v720_v43, 0.0 }
  0xf1   :  { %1158 = vrsqrt.f32 %v741_v46  ;;  %v727_v39 = vmax.f32 %v719_v30, 0.0 }
  0xf2   :  { %v1149_v45 = vpop.eup %1148  ;;  %v744_v51 = vadd.f32 1e-05, %v728_v15 }
  0xf3   :  { %v1151_v54 = vpop.eup %1150  ;;  %v754_v29 = vmul.f32 %v1149_v45, %v730_v13  ;;  %v743_v55 = vadd.f32 1e-05, %v727_v39 }
  0xf4   :  { %v753_v19 = vmul.f32 %v1151_v54, %v729_v42  ;;  %1160 = vrsqrt.f32 %v744_v51 }
  0xf5   :  { %870 = vperm.xlu0 %1131, %v754_v29   ;;  %v770_v57 = vmul.f32 %v754_v29, %v1567_v23  ;;  %1162 = vrsqrt.f32 %v743_v55  ;;  %v736_v23 = vld [vmem:[%s1738_s4 + $0x38] sm:$0xff] }
  0xf6   :  { %v1153_v34 = vpop.eup %1152  ;;  %865 = vperm.xlu1 %1130, %v753_v19   ;;  %v769_v52 = vmul.f32 %v753_v19, %v1569_v10 }
  0xf7   :  { %v1155_v37 = vpop.eup %1154  ;;  %v756_v38 = vmul.f32 %v1153_v34, %v732_v21  ;;  %v778_v62 = vsub.f32 %v762_v59, %v770_v57 }
  0xf8   :  { %v755_v40 = vmul.f32 %v1155_v37, %v731_v53  ;;  %v777_v60 = vsub.f32 %v761_v58, %v769_v52 }
  0xf9   :  { %880 = vperm.xlu0 %1131, %v756_v38   ;;  %v772_v0 = vmul.f32 %v756_v38, %v1575_v25 }
  0xfa   :  { %v1157_v47 = vpop.eup %1156  ;;  %875 = vperm.xlu1 %1130, %v755_v40   ;;  %v771_v10 = vmul.f32 %v755_v40, %v1579_v22 }
  0xfb   :  { %v1159_v48 = vpop.eup %1158  ;;  %v758_v49 = vmul.f32 %v1157_v47, %v734_v41  ;;  %v780_v22 = vsub.f32 %v764_v27, %v772_v0 }
  0xfc   :  { %v757_v56 = vmul.f32 %v1159_v48, %v733_v44  ;;  %v779_v3 = vsub.f32 %v763_v63, %v771_v10 }
  0xfd   :  { %890 = vperm.xlu0 %1131, %v758_v49   ;;  %v774_v4 = vmul.f32 %v758_v49, %v1582_v31  ;;  %v768_v31 = vld [vmem:[%s1739_s5 + $0x38] sm:$0xff] }
  0xfe   :  { %885 = vperm.xlu1 %1130, %v757_v56   ;;  %v1161_v61 = vpop.eup %1160  ;;  %v773_v2 = vmul.f32 %v757_v56, %v1585_v50 }
  0xff   :  { %v760_v24 = vmul.f32 %v1161_v61, %v736_v23  ;;  %v1163_v7 = vpop.eup %1162  ;;  %v782_v50 = vsub.f32 %v766_v36, %v774_v4  ;;  %v1686_v4 = vld [vmem:[%s1736_s2] ss:$0 sm:$0xff]  ;;  %s1217_s2 = smov [#allocation7]  }
 0x100   :  { %v781_v25 = vsub.f32 %v765_v26, %v773_v2  ;;  %v759_v8 = vmul.f32 %v1163_v7, %v735_v33 }
 0x101   :  { %788 = vperm.xlu0 %1131, %v777_v60   ;;  %v776_v17 = vmul.f32 %v760_v24, %v1595_v9 }
 0x102   :  { %793 = vperm.xlu1 %1130, %v778_v62   ;;  %v775_v5 = vmul.f32 %v759_v8, %v1599_v16 }
 0x103   :  { %v784_v16 = vsub.f32 %v768_v31, %v776_v17 }
 0x104   :  { %v783_v12 = vsub.f32 %v767_v11, %v775_v5 }
 0x105   :  { %900 = vperm.xlu0 %1131, %v760_v24  }
 0x106   :  { %798 = vperm.xlu1 %1130, %v779_v3  }
 0x10a   :  { %803 = vperm.xlu1 %1130, %v780_v22  }
 0x10e   :  { %808 = vperm.xlu1 %1130, %v781_v25  }
 0x112   :  { %813 = vperm.xlu1 %1130, %v782_v50   ;;  %v1058_v1 = vpop.f32.mrb[0].mxu0 }
 0x113   :  { %v1082_v6 = vpop.f32.mrb[0].mxu1  ;;  %v1059_v18 = vpop.f32.mrb[1].mxu0 }
 0x114   :  { %v1060_v32 = vadd.f32 %v1059_v18, %v1058_v1  ;;  %v1083_v14 = vpop.f32.mrb[1].mxu1  ;;  %v1061_v35 = vpop.f32.mrb[2].mxu0 }
 0x115   :  { %v1084_v43 = vadd.f32 %v1083_v14, %v1082_v6  ;;  %v1085_v46 = vpop.f32.mrb[2].mxu1  ;;  %v1062_v28 = vpop.f32.mrb[3].mxu0 }
 0x116   :  { %818 = vperm.xlu1 %1130, %v783_v12   ;;  %v1063_v13 = vadd.f32 %v1062_v28, %v1061_v35  ;;  %v1086_v15 = vpop.f32.mrb[3].mxu1 }
 0x117   :  { %v1087_v42 = vadd.f32 %v1086_v15, %v1085_v46 }
 0x11a   :  { %823 = vperm.xlu1 %1130, %v784_v16   ;;  %v1064_v9 = vpop.f32.mrb[4].mxu0 }
 0x11b   :  { %v1088_v20 = vpop.f32.mrb[4].mxu1  ;;  %v1065_v45 = vpop.f32.mrb[5].mxu0 }
 0x11c   :  { %v1066_v51 = vadd.f32 %v1065_v45, %v1064_v9  ;;  %v1089_v54 = vpop.f32.mrb[5].mxu1  ;;  %v1067_v29 = vpop.f32.mrb[6].mxu0 }
 0x11d   :  { %v1659_v30 = vadd.f32 %v1089_v54, %v1088_v20  ;;  %v1091_v19 = vpop.f32.mrb[6].mxu1  ;;  %v1068_v21 = vpop.f32.mrb[7].mxu0 }
 0x11e   :  { %895 = vperm.xlu1 %1130, %v759_v8   ;;  %v1661_v53 = vadd.f32 %v1068_v21, %v1067_v29  ;;  %v1092_v34 = vpop.f32.mrb[7].mxu1  ;;  %v1691_v8 = vld [vmem:[%s1737_s3] ss:$0 sm:$0xff]  ;;  %s1012_s3 = sshll.u32 %s1217_s2, 4  ;;  %s1013_s3 = int_to_ptr.vmem [resolvable:$true] %s1012_s3 }
 0x11f   :  { %v1663_v37 = vadd.f32 %v1092_v34, %v1091_v19  ;;  %s1186_s24 = scalar_lea.vmem %s1013_s3, 2048  ;;  %p1191_p9 = scmp.lt.s32.totalorder %s1013_s3, %s1013_s3 }
 0x120   :  { %p1187_p8 = scmp.ne.s32.totalorder %s1013_s3, %s1186_s24  ;;  %p1192_p10 = scmp.lt.s32.totalorder %s1186_s24, %s1186_s24 }
 0x122   :  { %v1070_v38 = vpop.f32.mrb[8].mxu0  ;;  %p1193_p11 = por %p1192_p10, %p1191_p9 }
 0x123   :  { %v1094_v39 = vpop.f32.mrb[8].mxu1  ;;  %v1071_v40 = vpop.f32.mrb[9].mxu0 }
 0x124   :  { %v1665_v41 = vadd.f32 %v1071_v40, %v1070_v38  ;;  %v1095_v44 = vpop.f32.mrb[9].mxu1  ;;  %v1073_v47 = vpop.f32.mrb[10].mxu0  ;;  %p1194_p12 = pnand %p1193_p11, %p1187_p8 }
 0x125   :  { %v1667_v48 = vadd.f32 %v1095_v44, %v1094_v39  ;;  %v1097_v49 = vpop.f32.mrb[10].mxu1  ;;  %v1074_v52 = vpop.f32.mrb[11].mxu0 }
 0x126   :  { %v1669_v55 = vadd.f32 %v1074_v52, %v1073_v47  ;;  %v1098_v56 = vpop.f32.mrb[11].mxu1 }
 0x127   :  { %v1671_v57 = vadd.f32 %v1098_v56, %v1097_v49 }
 0x12a   :  { %v1076_v58 = vpop.f32.mrb[12].mxu0 }
 0x12b   :  { %v1100_v59 = vpop.f32.mrb[12].mxu1  ;;  %v1077_v60 = vpop.f32.mrb[13].mxu0 }
 0x12c   :  { %v1673_v61 = vadd.f32 %v1077_v60, %v1076_v58  ;;  %v1101_v62 = vpop.f32.mrb[13].mxu1  ;;  %v1079_v10 = vpop.f32.mrb[14].mxu0 }
 0x12d   :  { %v1675_v23 = vadd.f32 %v1101_v62, %v1100_v59  ;;  %v1103_v63 = vpop.f32.mrb[14].mxu1  ;;  %v1080_v24 = vpop.f32.mrb[15].mxu0 }
 0x12e   :  { %v1677_v3 = vadd.f32 %v1080_v24, %v1079_v10  ;;  %v1104_v0 = vpop.f32.mrb[15].mxu1 }
 0x12f   :  { %v1679_v27 = vadd.f32 %v1104_v0, %v1103_v63 }
 0x174   :  { %v871_v22 = vpop.permute.xlu0 %870 }
 0x175   :  { %v866_v2 = vpop.permute.xlu1 %865  ;;  %v904_v1 = vmul.f32 %v1063_v13, %v871_v22  ;;  %v960_v6 = vmul.f32 %v1087_v42, %v871_v22 }
 0x176   :  { %v903_v12 = vmul.f32 %v1060_v32, %v866_v2  ;;  %v959_v17 = vmul.f32 %v1084_v43, %v866_v2 }
 0x178   :  { %v881_v7 = vpop.permute.xlu0 %880 }
 0x179   :  { %v876_v26 = vpop.permute.xlu1 %875  ;;  %v906_v40 = vmul.f32 %v1661_v53, %v881_v7  ;;  %v962_v44 = vmul.f32 %v1663_v37, %v881_v7 }
 0x17a   :  { %v905_v46 = vmul.f32 %v1066_v51, %v876_v26  ;;  %v961_v13 = vmul.f32 %v1659_v30, %v876_v26 }
 0x17c   :  { %v1681_v33 = vpop.permute.xlu0 %890 }
 0x17d   :  { %v886_v25 = vpop.permute.xlu1 %885 }
 0x17e   :  { %v907_v37 = vmul.f32 %v1665_v41, %v886_v25  ;;  %v963_v63 = vmul.f32 %v1667_v48, %v886_v25 }
 0x180   :  { %v789_v36 = vpop.permute.xlu0 %788 }
 0x181   :  { %v794_v50 = vpop.permute.xlu1 %793  ;;  %v832_v5 = vmul.f32 %v1686_v4, %v789_v36 }
 0x182   :  { %v833_v11 = vmul.f32 %v1686_v4, %v794_v50  ;;  %v908_v50 = vmul.f32 %v1669_v55, %v1681_v33 }
 0x183   :  { %v847_v31 = vadd.f32 %v1691_v8, %v832_v5  ;;  %v964_v5 = vmul.f32 %v1671_v57, %v1681_v33 }
 0x184   :  { %v848_v18 = vadd.f32 %v1691_v8, %v833_v11 }
 0x185   :  { %v911_v14 = vadd.f32 %v903_v12, %v847_v31  ;;  %v967_v35 = vadd.f32 %v959_v17, %v847_v31  ;;  %v799_v16 = vpop.permute.xlu1 %798 }
 0x186   :  { %v912_v28 = vadd.f32 %v904_v1, %v848_v18  ;;  %v968_v15 = vadd.f32 %v960_v6, %v848_v18  ;;  %v834_v9 = vmul.f32 %v1686_v4, %v799_v16  ;;  %v901_v18 = vpop.permute.xlu0 %900 }
 0x187   :  { %vm919_vm1 = vcmp.ge.f32.partialorder %v911_v14, 0.0  ;;  %v927_v20 = vmul.f32 0.01, %v911_v14  ;;  %vm975_vm2 = vcmp.ge.f32.partialorder %v967_v35, 0.0  ;;  %v983_v45 = vmul.f32 0.01, %v967_v35 }
 0x188   :  { %vm920_vm3 = vcmp.ge.f32.partialorder %v912_v28, 0.0  ;;  %v928_v32 = vmul.f32 0.01, %v912_v28  ;;  %vm976_vm4 = vcmp.ge.f32.partialorder %v968_v15, 0.0  ;;  %v984_v43 = vmul.f32 0.01, %v968_v15 }
 0x189   :  { %v935_v42 = vsel %vm919_vm1, %v911_v14, %v927_v20  ;;  %v991_v54 = vsel %vm975_vm2, %v967_v35, %v983_v45  ;;  %v849_v29 = vadd.f32 %v1691_v8, %v834_v9  ;;  %v804_v19 = vpop.permute.xlu1 %803 }
 0x18a   :  { %v936_v51 = vsel %vm920_vm3, %v912_v28, %v928_v32  ;;  %v992_v21 = vsel %vm976_vm4, %v968_v15, %v984_v43  ;;  %943 = vst [vmem:[#allocation7] sm:$0xff] %v935_v42  ;;  %999 = vst [vmem:[#allocation7 + $0x40] sm:$0xff] %v991_v54  ;;  %v835_v34 = vmul.f32 %v1686_v4, %v804_v19 }
 0x18b   :  { %944 = vst [vmem:[#allocation7 + $0x8] sm:$0xff] %v936_v51  ;;  %1000 = vst [vmem:[#allocation7 + $0x48] sm:$0xff] %v992_v21  ;;  %v913_v38 = vadd.f32 %v905_v46, %v849_v29  ;;  %v969_v39 = vadd.f32 %v961_v13, %v849_v29  ;;  %v910_v46 = vmul.f32 %v1677_v3, %v901_v18 }
 0x18c   :  { %v850_v30 = vadd.f32 %v1691_v8, %v835_v34  ;;  %v966_v28 = vmul.f32 %v1679_v27, %v901_v18 }
 0x18d   :  { %vm921_vm5 = vcmp.ge.f32.partialorder %v913_v38, 0.0  ;;  %v929_v47 = vmul.f32 0.01, %v913_v38  ;;  %vm977_vm6 = vcmp.ge.f32.partialorder %v969_v39, 0.0  ;;  %v985_v49 = vmul.f32 0.01, %v969_v39  ;;  %v809_v52 = vpop.permute.xlu1 %808 }
 0x18e   :  { %v914_v56 = vadd.f32 %v906_v40, %v850_v30  ;;  %v970_v58 = vadd.f32 %v962_v44, %v850_v30  ;;  %v836_v59 = vmul.f32 %v1686_v4, %v809_v52 }
 0x18f   :  { %v937_v60 = vsel %vm921_vm5, %v913_v38, %v929_v47  ;;  %v993_v62 = vsel %vm977_vm6, %v969_v39, %v985_v49 }
 0x190   :  { %945 = vst [vmem:[#allocation7 + $0x10] sm:$0xff] %v937_v60  ;;  %1001 = vst [vmem:[#allocation7 + $0x50] sm:$0xff] %v993_v62  ;;  %vm922_vm7 = vcmp.ge.f32.partialorder %v914_v56, 0.0  ;;  %v930_v10 = vmul.f32 0.01, %v914_v56  ;;  %vm978_vm8 = vcmp.ge.f32.partialorder %v970_v58, 0.0  ;;  %v851_v24 = vadd.f32 %v1691_v8, %v836_v59 }
 0x191   :  { %v986_v53 = vmul.f32 0.01, %v970_v58  ;;  %v814_v0 = vpop.permute.xlu1 %813 }
 0x192   :  { %v938_v22 = vsel %vm922_vm7, %v914_v56, %v930_v10  ;;  %v837_v7 = vmul.f32 %v1686_v4, %v814_v0  ;;  %v915_v26 = vadd.f32 %v907_v37, %v851_v24  ;;  %v971_v36 = vadd.f32 %v963_v63, %v851_v24 }
 0x193   :  { %v994_v2 = vsel %vm978_vm8, %v970_v58, %v986_v53  ;;  %946 = vst [vmem:[#allocation7 + $0x18] sm:$0xff] %v938_v22 }
 0x194   :  { %1002 = vst [vmem:[#allocation7 + $0x58] sm:$0xff] %v994_v2  ;;  %v852_v41 = vadd.f32 %v1691_v8, %v837_v7  ;;  %vm923_vm9 = vcmp.ge.f32.partialorder %v915_v26, 0.0  ;;  %v931_v48 = vmul.f32 0.01, %v915_v26  ;;  %vm979_vm10 = vcmp.ge.f32.partialorder %v971_v36, 0.0 }
 0x195   :  { %v987_v25 = vmul.f32 0.01, %v971_v36  ;;  %v819_v11 = vpop.permute.xlu1 %818 }
 0x196   :  { %v916_v12 = vadd.f32 %v908_v50, %v852_v41  ;;  %v972_v17 = vadd.f32 %v964_v5, %v852_v41  ;;  %v939_v31 = vsel %vm923_vm9, %v915_v26, %v931_v48  ;;  %v838_v16 = vmul.f32 %v1686_v4, %v819_v11 }
 0x197   :  { %v995_v1 = vsel %vm979_vm10, %v971_v36, %v987_v25  ;;  %947 = vst [vmem:[#allocation7 + $0x20] sm:$0xff] %v939_v31 }
 0x198   :  { %1003 = vst [vmem:[#allocation7 + $0x60] sm:$0xff] %v995_v1  ;;  %vm924_vm11 = vcmp.ge.f32.partialorder %v916_v12, 0.0  ;;  %v932_v6 = vmul.f32 0.01, %v916_v12  ;;  %vm980_vm12 = vcmp.ge.f32.partialorder %v972_v17, 0.0  ;;  %v853_v13 = vadd.f32 %v1691_v8, %v838_v16 }
 0x199   :  { %v988_v55 = vmul.f32 0.01, %v972_v17  ;;  %v824_v14 = vpop.permute.xlu1 %823 }
 0x19a   :  { %v940_v57 = vsel %vm924_vm11, %v916_v12, %v932_v6  ;;  %v839_v35 = vmul.f32 %v1686_v4, %v824_v14 }
 0x19b   :  { %v996_v33 = vsel %vm980_vm12, %v972_v17, %v988_v55  ;;  %948 = vst [vmem:[#allocation7 + $0x28] sm:$0xff] %v940_v57 }
 0x19c   :  { %1004 = vst [vmem:[#allocation7 + $0x68] sm:$0xff] %v996_v33  ;;  %v854_v15 = vadd.f32 %v1691_v8, %v839_v35 }
 0x19d   :  { %v896_v9 = vpop.permute.xlu1 %895 }
 0x19e   :  { %v918_v20 = vadd.f32 %v910_v46, %v854_v15  ;;  %v974_v45 = vadd.f32 %v966_v28, %v854_v15  ;;  %v909_v32 = vmul.f32 %v1673_v61, %v896_v9  ;;  %v965_v43 = vmul.f32 %v1675_v23, %v896_v9 }
 0x1a0   :  { %vm926_vm13 = vcmp.ge.f32.partialorder %v918_v20, 0.0  ;;  %v934_v42 = vmul.f32 0.01, %v918_v20  ;;  %vm982_vm14 = vcmp.ge.f32.partialorder %v974_v45, 0.0  ;;  %v990_v4 = vmul.f32 0.01, %v974_v45 }
 0x1a1   :  { %v917_v3 = vadd.f32 %v909_v32, %v853_v13  ;;  %v973_v54 = vadd.f32 %v965_v43, %v853_v13 }
 0x1a2   :  { %v942_v27 = vsel %vm926_vm13, %v918_v20, %v934_v42  ;;  %v998_v29 = vsel %vm982_vm14, %v974_v45, %v990_v4 }
 0x1a3   :  { %950 = vst [vmem:[#allocation7 + $0x38] sm:$0xff] %v942_v27  ;;  %1006 = vst [vmem:[#allocation7 + $0x78] sm:$0xff] %v998_v29  ;;  %vm925_vm15 = vcmp.ge.f32.partialorder %v917_v3, 0.0  ;;  %v933_v19 = vmul.f32 0.01, %v917_v3  ;;  %vm981_vm0 = vcmp.ge.f32.partialorder %v973_v54, 0.0 }
 0x1a4   :  { %v989_v61 = vmul.f32 0.01, %v973_v54 }
 0x1a5   :  { %v941_v23 = vsel %vm925_vm15, %v917_v3, %v933_v19 }
 0x1a6   :  { %v997_v51 = vsel %vm981_vm0, %v973_v54, %v989_v61  ;;  %949 = vst [vmem:[#allocation7 + $0x30] sm:$0xff] %v941_v23 }
 0x1a7   :  { %1005 = vst [vmem:[#allocation7 + $0x70] sm:$0xff] %v997_v51 }
 0x1a8   :  { %1197 = shalt.err (!%p1194_p12)
}
 0x1a9   :  { %s1198_s27 = scalar_lea.hbm %s1740_s6, 2048 }
 0x1aa   :  { %p1199_p13 = scmp.ne.s32.totalorder %s1740_s6, %s1198_s27  ;;  %p1202_p0 = scmp.lt.u32.totalorder %s1198_s27, %s1740_s6 }
 0x1ac   :  { %p1204_p1 = pnand %p1202_p0, %p1199_p13 }
 0x1ae   :  { %1207 = shalt.err (!%p1204_p1)
}
 0x1af   :  { %s1218_s8 = smov 128   ;;  %s1219_s9 = smov 8  }
 0x1b0   :  { %1018 = dma.vmem_to_hbm [thread:$0]  %s1013_s3, 2048, %s1740_s6, [#allocation6], %s1218_s8, %s1218_s8, %s1219_s9  }
 0x1b1   :  { %1210 = dma.done.wait [#allocation6], 2048  }
 0x1b2   :  { %1211 = vsyncadd [#allocation6], 4294965248 }
 0x1b3   :  { %1022 = vsyncpa [#allocation5], 1 }
 0x1b4   :  { %1023 = vsyncpa [#allocation6], 1 }

</bundles_post_ra>
